<compile_context>
chip_gen: v7x
topology: tpu7x:2x2x1
jax: 0.10.0
libtpu: 0.0.40
codegen_flags: <defaults>
</compile_context>

<pallas_src>
import math

import jax
import jax.numpy as jnp
from jax.experimental import pallas as pl
from jax.experimental.pallas import tpu as pltpu


def make_mha_kernel(num_heads: int, head_size: int, compute_dtype):
    H, hd = num_heads, head_size

    def mha_kernel(q_ref, k_ref, v_ref,
                   wq_ref, wk_ref, wv_ref, wo_ref,
                   bq_ref, bk_ref, bv_ref, bo_ref,
                   o_ref, kv_ref):
        # ---- Per-batch K/V projection cache (computed once per batch) ------
        @pl.when(pl.program_id(1) == 0)
        def _():
            k_p = jnp.dot(k_ref[...], wk_ref[...],
                          preferred_element_type=jnp.float32) + bk_ref[...]
            v_p = jnp.dot(v_ref[...], wv_ref[...],
                          preferred_element_type=jnp.float32) + bv_ref[...]
            kv_ref[0] = k_p.astype(kv_ref.dtype)
            kv_ref[1] = v_p.astype(kv_ref.dtype)

        # ---- Full-width Q projection (scale already folded into wq/bq) -----
        q_p = (jnp.dot(q_ref[...], wq_ref[...],
                       preferred_element_type=jnp.float32)
               + bq_ref[...]).astype(compute_dtype)

        k_p = kv_ref[0]          # (Skv, E), compute dtype
        v_p = kv_ref[1]          # (Skv, E), compute dtype

        # ---- Per-head attention on lane slices of the projections ----------
        # Static loop is fine for small H; for large H switch to lax.fori_loop
        # or a head grid axis to bound vreg live ranges (perf feedback #7).
        head_outs = []
        for h in range(H):
            sl = slice(h * hd, (h + 1) * hd)
            s = jnp.einsum("qd,kd->qk", q_p[:, sl], k_p[:, sl],
                           preferred_element_type=jnp.float32)   # (tq, Skv)
            m = jnp.max(s, axis=-1, keepdims=True)
            e = jnp.exp(s - m)
            # Exact reciprocal: approx=True (EUP vrcp) is a free-slot win but
            # was flagged as a tolerance risk vs. the f32 reference.
            p = e * pl.reciprocal(jnp.sum(e, axis=-1, keepdims=True))
            head_outs.append(
                jnp.dot(p.astype(compute_dtype), v_p[:, sl],
                        preferred_element_type=jnp.float32))      # (tq, hd)

        # ---- Fused output projection: concat -> single (tq,E)@(E,E) --------
        concat = jnp.concatenate(head_outs, axis=-1).astype(compute_dtype)
        out = jnp.dot(concat, wo_ref[...],
                      preferred_element_type=jnp.float32) + bo_ref[...]
        o_ref[...] = out.astype(o_ref.dtype)

    return mha_kernel


def _pack_params(params, embed_size: int, compute_dtype):
    """Wrapper-side layout plumbing: pre-transpose to (E_in, E_out), fold the
    1/sqrt(embed_size) scale into the Q weight/bias, cast weights to the
    compute dtype (biases stay f32 -- added in f32 accumulation)."""
    E = embed_size
    scale = 1.0 / math.sqrt(E)   # module divides by sqrt(embed_size)
    wq = (params["wq"] * scale).T.astype(compute_dtype)
    wk = params["wk"].T.astype(compute_dtype)
    wv = params["wv"].T.astype(compute_dtype)
    wo = params["wo"].T.astype(compute_dtype)
    bq = (params["bq"] * scale).reshape(1, E).astype(jnp.float32)
    bk = params["bk"].reshape(1, E).astype(jnp.float32)
    bv = params["bv"].reshape(1, E).astype(jnp.float32)
    bo = params["bo"].reshape(1, E).astype(jnp.float32)
    return wq, wk, wv, wo, bq, bk, bv, bo


def _pick_q_tile(seq_len: int) -> int:
    # Prefer large lane-dense tiles that divide Sq (amortize ~0.35us/step and
    # keep the output stores unmasked).  Re-sweep {512, 256, 128} per chip
    # generation (v7x has half the VMEM of v5e/v6e).
    for t in (512, 256, 128):
        if seq_len % t == 0:
            return t
    if seq_len <= 512:
        return seq_len           # single block equal to the full dim
    return 256                   # padded tail block (cdiv grid), rows masked on writeback


def multi_head_attention(q, k, v, params, *, num_heads: int,
                         compute_dtype=None, q_tile: int | None = None):
    """q: (B, Sq, E); k, v: (B, Skv, E). Returns (B, Sq, E) in q.dtype.

    compute_dtype controls MXU operand precision (e.g. jnp.bfloat16);
    accumulation is always f32 via preferred_element_type.
    """
    B, Sq, E = q.shape
    _, Skv, _ = k.shape
    hd = E // num_heads
    assert hd * num_heads == E, "Heads cannot split embedding size equally"

    cd = jnp.dtype(compute_dtype) if compute_dtype is not None else jnp.dtype(q.dtype)
    out_dtype = q.dtype

    wq, wk, wv, wo, bq, bk, bv, bo = _pack_params(params, E, cd)
    q_c, k_c, v_c = q.astype(cd), k.astype(cd), v.astype(cd)

    tq = q_tile if q_tile is not None else _pick_q_tile(Sq)
    n_qt = pl.cdiv(Sq, tq)

    kernel = make_mha_kernel(num_heads, hd, cd)

    # Untiled, single-buffered VMEM residency for the grid-constant params.
    vmem_spec = pl.BlockSpec(memory_space=pltpu.MemorySpace.VMEM)
    q_spec = pl.BlockSpec((pl.Squeezed(), tq, E), lambda b, i: (b, i, 0))
    kv_spec = pl.BlockSpec((pl.Squeezed(), Skv, E), lambda b, i: (b, 0, 0))
    out_spec = pl.BlockSpec((pl.Squeezed(), tq, E), lambda b, i: (b, i, 0))

    # Advisory cost hint (K/V projections counted once per batch).
    flops = B * (4 * Sq * E * E + 4 * Skv * E * E + 4 * Sq * Skv * E)
    transcendentals = B * num_heads * Sq * Skv
    bytes_accessed = (cd.itemsize * (B * Sq * E + 2 * B * Skv * E + 4 * E * E)
                      + 4 * 4 * E
                      + jnp.dtype(out_dtype).itemsize * B * Sq * E)

    return pl.pallas_call(
        kernel,
        out_shape=jax.ShapeDtypeStruct((B, Sq, E), out_dtype),
        grid_spec=pltpu.PrefetchScalarGridSpec(
            num_scalar_prefetch=0,
            grid=(B, n_qt),
            in_specs=[q_spec, kv_spec, kv_spec,
                      vmem_spec, vmem_spec, vmem_spec, vmem_spec,
                      vmem_spec, vmem_spec, vmem_spec, vmem_spec],
            out_specs=out_spec,
            scratch_shapes=[pltpu.VMEM((2, Skv, E), cd)],   # cached K/V projections
        ),
        compiler_params=pltpu.CompilerParams(
            dimension_semantics=("parallel", "arbitrary"),
            vmem_limit_bytes=64 * 1024 * 1024),
        cost_estimate=pl.CostEstimate(
            flops=flops, transcendentals=transcendentals,
            bytes_accessed=bytes_accessed),
    )(q_c, k_c, v_c, wq, wk, wv, wo, bq, bk, bv, bo)


def mha_reference(q, k, v, params, *, num_heads: int):
    """Pure-JAX reference mirroring the PyTorch module (eval mode, no mask)."""
    B, Sq, E = q.shape
    _, Skv, _ = k.shape
    hd = E // num_heads

    def lin(x, w, b):
        return x @ w.T + b

    qp = lin(q, params["wq"], params["bq"]).reshape(B, Sq, num_heads, hd)
    kp = lin(k, params["wk"], params["bk"]).reshape(B, Skv, num_heads, hd)
    vp = lin(v, params["wv"], params["bv"]).reshape(B, Skv, num_heads, hd)

    scores = jnp.einsum("bqhe,bkhe->bhqk", qp, kp) / math.sqrt(E)
    probs = jax.nn.softmax(scores, axis=-1)
    attn = jnp.einsum("bhqk,bkhd->bqhd", probs, vp)
    return lin(attn.reshape(B, Sq, E), params["wo"], params["bo"])


def init_params(key, embed_size: int):
    """Deterministic PyTorch-Linear-like init: U(-1/sqrt(E), 1/sqrt(E))."""
    bound = 1.0 / math.sqrt(embed_size)
    names = ["wq", "bq", "wk", "bk", "wv", "bv", "wo", "bo"]
    keys = jax.random.split(key, len(names))
    params = {}
    for name, kk in zip(names, keys):
        shape = (embed_size, embed_size) if name.startswith("w") else (1, embed_size)
        params[name] = jax.random.uniform(
            kk, shape, minval=-bound, maxval=bound, dtype=jnp.float32)
    return params


if __name__ == "__main__":
    key = jax.random.PRNGKey(0)

    # --- Test 1: small shapes consistent with the module (B=2, S=8, E=32) ---
    B, S, E, num_heads = 2, 8, 32, 4
    kq, kk_, kv, kp, kq2, kk2, kv2, kp2 = jax.random.split(key, 8)
    q = jax.random.normal(kq, (B, S, E), dtype=jnp.float32)
    k = jax.random.normal(kk_, (B, S, E), dtype=jnp.float32)
    v = jax.random.normal(kv, (B, S, E), dtype=jnp.float32)
    params = init_params(kp, E)

    out = jax.block_until_ready(
        multi_head_attention(q, k, v, params, num_heads=num_heads))
    ref = mha_reference(q, k, v, params, num_heads=num_heads)
    assert out.shape == (B, S, E)
    assert jnp.allclose(out, ref, atol=1e-4, rtol=1e-4), (
        f"max abs diff {jnp.max(jnp.abs(out - ref))}")

    # --- Test 2: multi-q-tile case exercising the per-batch K/V cache -------
    B2, Sq2, Skv2, E2, H2 = 2, 256, 128, 128, 4
    q2 = jax.random.normal(kq2, (B2, Sq2, E2), dtype=jnp.float32)
    k2 = jax.random.normal(kk2, (B2, Skv2, E2), dtype=jnp.float32)
    v2 = jax.random.normal(kv2, (B2, Skv2, E2), dtype=jnp.float32)
    params2 = init_params(kp2, E2)

    out2 = jax.block_until_ready(
        multi_head_attention(q2, k2, v2, params2, num_heads=H2, q_tile=128))
    ref2 = mha_reference(q2, k2, v2, params2, num_heads=H2)
    assert jnp.allclose(out2, ref2, atol=5e-3, rtol=5e-3), (
        f"max abs diff {jnp.max(jnp.abs(out2 - ref2))}")

    # --- Test 3: bf16 MXU operands with f32 accumulation ---------------------
    out_bf16 = jax.block_until_ready(
        multi_head_attention(q2, k2, v2, params2, num_heads=H2, q_tile=128,
                             compute_dtype=jnp.bfloat16))
    max_diff = float(jnp.max(jnp.abs(out_bf16 - ref2)))
    assert max_diff < 5e-2, f"bf16 max abs diff {max_diff}"

    print("KERNEL_OK")
</pallas_src>

<mosaic_0001>
module attributes {stable_mosaic.version = 11 : i64} {
  func.func @mha_kernel(%arg0: i32, %arg1: i32, %arg2: memref<1x8x32xf32, #tpu.memory_space<vmem>>, %arg3: memref<1x8x32xf32, #tpu.memory_space<vmem>>, %arg4: memref<1x8x32xf32, #tpu.memory_space<vmem>>, %arg5: memref<32x32xf32, #tpu.memory_space<vmem>>, %arg6: memref<32x32xf32, #tpu.memory_space<vmem>>, %arg7: memref<32x32xf32, #tpu.memory_space<vmem>>, %arg8: memref<32x32xf32, #tpu.memory_space<vmem>>, %arg9: memref<1x32xf32, #tpu.memory_space<vmem>>, %arg10: memref<1x32xf32, #tpu.memory_space<vmem>>, %arg11: memref<1x32xf32, #tpu.memory_space<vmem>>, %arg12: memref<1x32xf32, #tpu.memory_space<vmem>>, %arg13: memref<1x8x32xf32, #tpu.memory_space<vmem>>, %arg14: memref<2x8x32xf32, #tpu.memory_space<vmem>>) attributes {dimension_semantics = [#tpu.dimension_semantics<parallel>, #tpu.dimension_semantics<arbitrary>], iteration_bounds = array<i64: 2, 1>, scalar_prefetch = 0 : i64, scratch_operands = 1 : i64, tpu.core_type = #tpu.core_type<tc>, window_params = [{transform_indices = @transform_0, window_bounds = array<i64: 1, 8, 32>}, {transform_indices = @transform_1, window_bounds = array<i64: 1, 8, 32>}, {transform_indices = @transform_2, window_bounds = array<i64: 1, 8, 32>}, {pipeline_mode = #tpu.pipeline_mode<synchronous>, transform_indices = @transform_3, window_bounds = array<i64: 32, 32>}, {pipeline_mode = #tpu.pipeline_mode<synchronous>, transform_indices = @transform_4, window_bounds = array<i64: 32, 32>}, {pipeline_mode = #tpu.pipeline_mode<synchronous>, transform_indices = @transform_5, window_bounds = array<i64: 32, 32>}, {pipeline_mode = #tpu.pipeline_mode<synchronous>, transform_indices = @transform_6, window_bounds = array<i64: 32, 32>}, {pipeline_mode = #tpu.pipeline_mode<synchronous>, transform_indices = @transform_7, window_bounds = array<i64: 1, 32>}, {pipeline_mode = #tpu.pipeline_mode<synchronous>, transform_indices = @transform_8, window_bounds = array<i64: 1, 32>}, {pipeline_mode = #tpu.pipeline_mode<synchronous>, transform_indices = @transform_9, window_bounds = array<i64: 1, 32>}, {pipeline_mode = #tpu.pipeline_mode<synchronous>, transform_indices = @transform_10, window_bounds = array<i64: 1, 32>}, {transform_indices = @transform_11, window_bounds = array<i64: 1, 8, 32>}]} {
    %c0_i32 = arith.constant 0 : i32
    %0 = arith.cmpi eq, %arg1, %c0_i32 : i32
    %1 = arith.extui %0 : i1 to i32
    %c0_i32_0 = arith.constant 0 : i32
    %2 = arith.cmpi ne, %1, %c0_i32_0 : i32
    scf.if %2 {
      %c0_36 = arith.constant 0 : index
      %c0_37 = arith.constant 0 : index
      %c0_38 = arith.constant 0 : index
      %83 = vector.load %arg3[%c0_36, %c0_37, %c0_38] : memref<1x8x32xf32, #tpu.memory_space<vmem>>, vector<1x8x32xf32>
      %84 = vector.shape_cast %83 : vector<1x8x32xf32> to vector<8x32xf32>
      %c0_39 = arith.constant 0 : index
      %c0_40 = arith.constant 0 : index
      %85 = vector.load %arg6[%c0_39, %c0_40] : memref<32x32xf32, #tpu.memory_space<vmem>>, vector<32x32xf32>
      %cst_41 = arith.constant dense<0.000000e+00> : vector<8x32xf32>
      %86 = tpu.matmul %84, %85, %cst_41 {dimension_numbers = #tpu.dot_dimension_numbers<[1], [0], [0], [1], [0, 0, 1, 1], [], []>} : vector<8x32xf32>, vector<32x32xf32>, vector<8x32xf32> -> vector<8x32xf32>
      %c0_42 = arith.constant 0 : index
      %c0_43 = arith.constant 0 : index
      %87 = vector.load %arg10[%c0_42, %c0_43] : memref<1x32xf32, #tpu.memory_space<vmem>>, vector<1x32xf32>
      %88 = vector.broadcast %87 : vector<1x32xf32> to vector<8x32xf32>
      %89 = arith.addf %86, %88 : vector<8x32xf32>
      %c0_44 = arith.constant 0 : index
      %c0_45 = arith.constant 0 : index
      %c0_46 = arith.constant 0 : index
      %90 = vector.load %arg4[%c0_44, %c0_45, %c0_46] : memref<1x8x32xf32, #tpu.memory_space<vmem>>, vector<1x8x32xf32>
      %91 = vector.shape_cast %90 : vector<1x8x32xf32> to vector<8x32xf32>
      %c0_47 = arith.constant 0 : index
      %c0_48 = arith.constant 0 : index
      %92 = vector.load %arg7[%c0_47, %c0_48] : memref<32x32xf32, #tpu.memory_space<vmem>>, vector<32x32xf32>
      %cst_49 = arith.constant dense<0.000000e+00> : vector<8x32xf32>
      %93 = tpu.matmul %91, %92, %cst_49 {dimension_numbers = #tpu.dot_dimension_numbers<[1], [0], [0], [1], [0, 0, 1, 1], [], []>} : vector<8x32xf32>, vector<32x32xf32>, vector<8x32xf32> -> vector<8x32xf32>
      %c0_50 = arith.constant 0 : index
      %c0_51 = arith.constant 0 : index
      %94 = vector.load %arg11[%c0_50, %c0_51] : memref<1x32xf32, #tpu.memory_space<vmem>>, vector<1x32xf32>
      %95 = vector.broadcast %94 : vector<1x32xf32> to vector<8x32xf32>
      %96 = arith.addf %93, %95 : vector<8x32xf32>
      %c0_52 = arith.constant 0 : index
      %c0_53 = arith.constant 0 : index
      %c0_54 = arith.constant 0 : index
      %97 = vector.load %arg14[%c0_52, %c0_53, %c0_54] : memref<2x8x32xf32, #tpu.memory_space<vmem>>, vector<1x8x32xf32>
      %98 = vector.shape_cast %97 : vector<1x8x32xf32> to vector<8x32xf32>
      %99 = vector.shape_cast %89 : vector<8x32xf32> to vector<1x8x32xf32>
      tpu.vector_store %arg14[%c0_52, %c0_53, %c0_54], %99 {strides = array<i32>} : memref<2x8x32xf32, #tpu.memory_space<vmem>>, vector<1x8x32xf32>,
      %c1_55 = arith.constant 1 : index
      %c0_56 = arith.constant 0 : index
      %c0_57 = arith.constant 0 : index
      %100 = vector.load %arg14[%c1_55, %c0_56, %c0_57] : memref<2x8x32xf32, #tpu.memory_space<vmem>>, vector<1x8x32xf32>
      %101 = vector.shape_cast %100 : vector<1x8x32xf32> to vector<8x32xf32>
      %102 = vector.shape_cast %96 : vector<8x32xf32> to vector<1x8x32xf32>
      tpu.vector_store %arg14[%c1_55, %c0_56, %c0_57], %102 {strides = array<i32>} : memref<2x8x32xf32, #tpu.memory_space<vmem>>, vector<1x8x32xf32>,
    } else {
    }
    %c0 = arith.constant 0 : index
    %c0_1 = arith.constant 0 : index
    %c0_2 = arith.constant 0 : index
    %3 = vector.load %arg2[%c0, %c0_1, %c0_2] : memref<1x8x32xf32, #tpu.memory_space<vmem>>, vector<1x8x32xf32>
    %4 = vector.shape_cast %3 : vector<1x8x32xf32> to vector<8x32xf32>
    %c0_3 = arith.constant 0 : index
    %c0_4 = arith.constant 0 : index
    %5 = vector.load %arg5[%c0_3, %c0_4] : memref<32x32xf32, #tpu.memory_space<vmem>>, vector<32x32xf32>
    %cst = arith.constant dense<0.000000e+00> : vector<8x32xf32>
    %6 = tpu.matmul %4, %5, %cst {dimension_numbers = #tpu.dot_dimension_numbers<[1], [0], [0], [1], [0, 0, 1, 1], [], []>} : vector<8x32xf32>, vector<32x32xf32>, vector<8x32xf32> -> vector<8x32xf32>
    %c0_5 = arith.constant 0 : index
    %c0_6 = arith.constant 0 : index
    %7 = vector.load %arg9[%c0_5, %c0_6] : memref<1x32xf32, #tpu.memory_space<vmem>>, vector<1x32xf32>
    %8 = vector.broadcast %7 : vector<1x32xf32> to vector<8x32xf32>
    %9 = arith.addf %6, %8 : vector<8x32xf32>
    %c0_7 = arith.constant 0 : index
    %c0_8 = arith.constant 0 : index
    %c0_9 = arith.constant 0 : index
    %10 = vector.load %arg14[%c0_7, %c0_8, %c0_9] : memref<2x8x32xf32, #tpu.memory_space<vmem>>, vector<1x8x32xf32>
    %11 = vector.shape_cast %10 : vector<1x8x32xf32> to vector<8x32xf32>
    %c1 = arith.constant 1 : index
    %c0_10 = arith.constant 0 : index
    %c0_11 = arith.constant 0 : index
    %12 = vector.load %arg14[%c1, %c0_10, %c0_11] : memref<2x8x32xf32, #tpu.memory_space<vmem>>, vector<1x8x32xf32>
    %13 = vector.shape_cast %12 : vector<1x8x32xf32> to vector<8x32xf32>
    %14 = vector.extract_strided_slice %9 {offsets = [0, 0], sizes = [8, 8], strides = [1, 1]} : vector<8x32xf32> to vector<8x8xf32>
    %15 = vector.extract_strided_slice %11 {offsets = [0, 0], sizes = [8, 8], strides = [1, 1]} : vector<8x32xf32> to vector<8x8xf32>
    "tpu.trace_start"() <{level = 10 : i32, message = "qd,kd->qk"}> : () -> ()
    %cst_12 = arith.constant dense<0.000000e+00> : vector<8x8xf32>
    %16 = tpu.matmul %14, %15, %cst_12 {dimension_numbers = #tpu.dot_dimension_numbers<[1], [1], [0], [0], [0, 0, 1, 0], [], []>} : vector<8x8xf32>, vector<8x8xf32>, vector<8x8xf32> -> vector<8x8xf32>
    "tpu.trace_stop"() : () -> ()
    %cst_13 = arith.constant dense<0xFF800000> : vector<8xf32>
    %17 = vector.multi_reduction <maximumf>, %16, %cst_13 [1] : vector<8x8xf32> to vector<8xf32>
    %18 = vector.shape_cast %17 : vector<8xf32> to vector<8x1xf32>
    %19 = vector.broadcast %18 : vector<8x1xf32> to vector<8x8xf32>
    %20 = arith.subf %16, %19 : vector<8x8xf32>
    %21 = math.exp %20 : vector<8x8xf32>
    %cst_14 = arith.constant dense<0.000000e+00> : vector<8xf32>
    %22 = vector.multi_reduction <add>, %21, %cst_14 [1] : vector<8x8xf32> to vector<8xf32>
    %23 = vector.shape_cast %22 : vector<8xf32> to vector<8x1xf32>
    %24 = tpu.reciprocal %23 : vector<8x1xf32> -> vector<8x1xf32>
    %25 = vector.broadcast %24 : vector<8x1xf32> to vector<8x8xf32>
    %26 = arith.mulf %21, %25 : vector<8x8xf32>
    %27 = vector.extract_strided_slice %13 {offsets = [0, 0], sizes = [8, 8], strides = [1, 1]} : vector<8x32xf32> to vector<8x8xf32>
    %cst_15 = arith.constant dense<0.000000e+00> : vector<8x8xf32>
    %28 = tpu.matmul %26, %27, %cst_15 {dimension_numbers = #tpu.dot_dimension_numbers<[1], [0], [0], [1], [0, 0, 1, 1], [], []>} : vector<8x8xf32>, vector<8x8xf32>, vector<8x8xf32> -> vector<8x8xf32>
    %29 = vector.extract_strided_slice %9 {offsets = [0, 8], sizes = [8, 8], strides = [1, 1]} : vector<8x32xf32> to vector<8x8xf32>
    %30 = vector.extract_strided_slice %11 {offsets = [0, 8], sizes = [8, 8], strides = [1, 1]} : vector<8x32xf32> to vector<8x8xf32>
    "tpu.trace_start"() <{level = 10 : i32, message = "qd,kd->qk"}> : () -> ()
    %cst_16 = arith.constant dense<0.000000e+00> : vector<8x8xf32>
    %31 = tpu.matmul %29, %30, %cst_16 {dimension_numbers = #tpu.dot_dimension_numbers<[1], [1], [0], [0], [0, 0, 1, 0], [], []>} : vector<8x8xf32>, vector<8x8xf32>, vector<8x8xf32> -> vector<8x8xf32>
    "tpu.trace_stop"() : () -> ()
    %cst_17 = arith.constant dense<0xFF800000> : vector<8xf32>
    %32 = vector.multi_reduction <maximumf>, %31, %cst_17 [1] : vector<8x8xf32> to vector<8xf32>
    %33 = vector.shape_cast %32 : vector<8xf32> to vector<8x1xf32>
    %34 = vector.broadcast %33 : vector<8x1xf32> to vector<8x8xf32>
    %35 = arith.subf %31, %34 : vector<8x8xf32>
    %36 = math.exp %35 : vector<8x8xf32>
    %cst_18 = arith.constant dense<0.000000e+00> : vector<8xf32>
    %37 = vector.multi_reduction <add>, %36, %cst_18 [1] : vector<8x8xf32> to vector<8xf32>
    %38 = vector.shape_cast %37 : vector<8xf32> to vector<8x1xf32>
    %39 = tpu.reciprocal %38 : vector<8x1xf32> -> vector<8x1xf32>
    %40 = vector.broadcast %39 : vector<8x1xf32> to vector<8x8xf32>
    %41 = arith.mulf %36, %40 : vector<8x8xf32>
    %42 = vector.extract_strided_slice %13 {offsets = [0, 8], sizes = [8, 8], strides = [1, 1]} : vector<8x32xf32> to vector<8x8xf32>
    %cst_19 = arith.constant dense<0.000000e+00> : vector<8x8xf32>
    %43 = tpu.matmul %41, %42, %cst_19 {dimension_numbers = #tpu.dot_dimension_numbers<[1], [0], [0], [1], [0, 0, 1, 1], [], []>} : vector<8x8xf32>, vector<8x8xf32>, vector<8x8xf32> -> vector<8x8xf32>
    %44 = vector.extract_strided_slice %9 {offsets = [0, 16], sizes = [8, 8], strides = [1, 1]} : vector<8x32xf32> to vector<8x8xf32>
    %45 = vector.extract_strided_slice %11 {offsets = [0, 16], sizes = [8, 8], strides = [1, 1]} : vector<8x32xf32> to vector<8x8xf32>
    "tpu.trace_start"() <{level = 10 : i32, message = "qd,kd->qk"}> : () -> ()
    %cst_20 = arith.constant dense<0.000000e+00> : vector<8x8xf32>
    %46 = tpu.matmul %44, %45, %cst_20 {dimension_numbers = #tpu.dot_dimension_numbers<[1], [1], [0], [0], [0, 0, 1, 0], [], []>} : vector<8x8xf32>, vector<8x8xf32>, vector<8x8xf32> -> vector<8x8xf32>
    "tpu.trace_stop"() : () -> ()
    %cst_21 = arith.constant dense<0xFF800000> : vector<8xf32>
    %47 = vector.multi_reduction <maximumf>, %46, %cst_21 [1] : vector<8x8xf32> to vector<8xf32>
    %48 = vector.shape_cast %47 : vector<8xf32> to vector<8x1xf32>
    %49 = vector.broadcast %48 : vector<8x1xf32> to vector<8x8xf32>
    %50 = arith.subf %46, %49 : vector<8x8xf32>
    %51 = math.exp %50 : vector<8x8xf32>
    %cst_22 = arith.constant dense<0.000000e+00> : vector<8xf32>
    %52 = vector.multi_reduction <add>, %51, %cst_22 [1] : vector<8x8xf32> to vector<8xf32>
    %53 = vector.shape_cast %52 : vector<8xf32> to vector<8x1xf32>
    %54 = tpu.reciprocal %53 : vector<8x1xf32> -> vector<8x1xf32>
    %55 = vector.broadcast %54 : vector<8x1xf32> to vector<8x8xf32>
    %56 = arith.mulf %51, %55 : vector<8x8xf32>
    %57 = vector.extract_strided_slice %13 {offsets = [0, 16], sizes = [8, 8], strides = [1, 1]} : vector<8x32xf32> to vector<8x8xf32>
    %cst_23 = arith.constant dense<0.000000e+00> : vector<8x8xf32>
    %58 = tpu.matmul %56, %57, %cst_23 {dimension_numbers = #tpu.dot_dimension_numbers<[1], [0], [0], [1], [0, 0, 1, 1], [], []>} : vector<8x8xf32>, vector<8x8xf32>, vector<8x8xf32> -> vector<8x8xf32>
    %59 = vector.extract_strided_slice %9 {offsets = [0, 24], sizes = [8, 8], strides = [1, 1]} : vector<8x32xf32> to vector<8x8xf32>
    %60 = vector.extract_strided_slice %11 {offsets = [0, 24], sizes = [8, 8], strides = [1, 1]} : vector<8x32xf32> to vector<8x8xf32>
    "tpu.trace_start"() <{level = 10 : i32, message = "qd,kd->qk"}> : () -> ()
    %cst_24 = arith.constant dense<0.000000e+00> : vector<8x8xf32>
    %61 = tpu.matmul %59, %60, %cst_24 {dimension_numbers = #tpu.dot_dimension_numbers<[1], [1], [0], [0], [0, 0, 1, 0], [], []>} : vector<8x8xf32>, vector<8x8xf32>, vector<8x8xf32> -> vector<8x8xf32>
    "tpu.trace_stop"() : () -> ()
    %cst_25 = arith.constant dense<0xFF800000> : vector<8xf32>
    %62 = vector.multi_reduction <maximumf>, %61, %cst_25 [1] : vector<8x8xf32> to vector<8xf32>
    %63 = vector.shape_cast %62 : vector<8xf32> to vector<8x1xf32>
    %64 = vector.broadcast %63 : vector<8x1xf32> to vector<8x8xf32>
    %65 = arith.subf %61, %64 : vector<8x8xf32>
    %66 = math.exp %65 : vector<8x8xf32>
    %cst_26 = arith.constant dense<0.000000e+00> : vector<8xf32>
    %67 = vector.multi_reduction <add>, %66, %cst_26 [1] : vector<8x8xf32> to vector<8xf32>
    %68 = vector.shape_cast %67 : vector<8xf32> to vector<8x1xf32>
    %69 = tpu.reciprocal %68 : vector<8x1xf32> -> vector<8x1xf32>
    %70 = vector.broadcast %69 : vector<8x1xf32> to vector<8x8xf32>
    %71 = arith.mulf %66, %70 : vector<8x8xf32>
    %72 = vector.extract_strided_slice %13 {offsets = [0, 24], sizes = [8, 8], strides = [1, 1]} : vector<8x32xf32> to vector<8x8xf32>
    %cst_27 = arith.constant dense<0.000000e+00> : vector<8x8xf32>
    %73 = tpu.matmul %71, %72, %cst_27 {dimension_numbers = #tpu.dot_dimension_numbers<[1], [0], [0], [1], [0, 0, 1, 1], [], []>} : vector<8x8xf32>, vector<8x8xf32>, vector<8x8xf32> -> vector<8x8xf32>
    %74 = tpu.concatenate %28, %43, %58, %73 in 1 : vector<8x8xf32>, vector<8x8xf32>, vector<8x8xf32>, vector<8x8xf32> -> vector<8x32xf32>
    %c0_28 = arith.constant 0 : index
    %c0_29 = arith.constant 0 : index
    %75 = vector.load %arg8[%c0_28, %c0_29] : memref<32x32xf32, #tpu.memory_space<vmem>>, vector<32x32xf32>
    %cst_30 = arith.constant dense<0.000000e+00> : vector<8x32xf32>
    %76 = tpu.matmul %74, %75, %cst_30 {dimension_numbers = #tpu.dot_dimension_numbers<[1], [0], [0], [1], [0, 0, 1, 1], [], []>} : vector<8x32xf32>, vector<32x32xf32>, vector<8x32xf32> -> vector<8x32xf32>
    %c0_31 = arith.constant 0 : index
    %c0_32 = arith.constant 0 : index
    %77 = vector.load %arg12[%c0_31, %c0_32] : memref<1x32xf32, #tpu.memory_space<vmem>>, vector<1x32xf32>
    %78 = vector.broadcast %77 : vector<1x32xf32> to vector<8x32xf32>
    %79 = arith.addf %76, %78 : vector<8x32xf32>
    %c0_33 = arith.constant 0 : index
    %c0_34 = arith.constant 0 : index
    %c0_35 = arith.constant 0 : index
    %80 = vector.load %arg13[%c0_33, %c0_34, %c0_35] : memref<1x8x32xf32, #tpu.memory_space<vmem>>, vector<1x8x32xf32>
    %81 = vector.shape_cast %80 : vector<1x8x32xf32> to vector<8x32xf32>
    %82 = vector.shape_cast %79 : vector<8x32xf32> to vector<1x8x32xf32>
    tpu.vector_store %arg13[%c0_33, %c0_34, %c0_35], %82 {strides = array<i32>} : memref<1x8x32xf32, #tpu.memory_space<vmem>>, vector<1x8x32xf32>,
    return
  }
  func.func @transform_0(%arg0: i32, %arg1: i32) -> (i32, i32, i32) {
    %c0_i32 = arith.constant 0 : i32
    %c0_i32_0 = arith.constant 0 : i32
    return %arg0, %arg1, %c0_i32 : i32, i32, i32
  }
  func.func @transform_1(%arg0: i32, %arg1: i32) -> (i32, i32, i32) {
    %c0_i32 = arith.constant 0 : i32
    %c0_i32_0 = arith.constant 0 : i32
    %c0_i32_1 = arith.constant 0 : i32
    return %arg0, %c0_i32, %c0_i32_0 : i32, i32, i32
  }
  func.func @transform_2(%arg0: i32, %arg1: i32) -> (i32, i32, i32) {
    %c0_i32 = arith.constant 0 : i32
    %c0_i32_0 = arith.constant 0 : i32
    %c0_i32_1 = arith.constant 0 : i32
    return %arg0, %c0_i32, %c0_i32_0 : i32, i32, i32
  }
  func.func @transform_3(%arg0: i32, %arg1: i32) -> (i32, i32) {
    %c0_i32 = arith.constant 0 : i32
    %c0_i32_0 = arith.constant 0 : i32
    %c0_i32_1 = arith.constant 0 : i32
    return %c0_i32, %c0_i32_0 : i32, i32
  }
  func.func @transform_4(%arg0: i32, %arg1: i32) -> (i32, i32) {
    %c0_i32 = arith.constant 0 : i32
    %c0_i32_0 = arith.constant 0 : i32
    %c0_i32_1 = arith.constant 0 : i32
    return %c0_i32, %c0_i32_0 : i32, i32
  }
  func.func @transform_5(%arg0: i32, %arg1: i32) -> (i32, i32) {
    %c0_i32 = arith.constant 0 : i32
    %c0_i32_0 = arith.constant 0 : i32
    %c0_i32_1 = arith.constant 0 : i32
    return %c0_i32, %c0_i32_0 : i32, i32
  }
  func.func @transform_6(%arg0: i32, %arg1: i32) -> (i32, i32) {
    %c0_i32 = arith.constant 0 : i32
    %c0_i32_0 = arith.constant 0 : i32
    %c0_i32_1 = arith.constant 0 : i32
    return %c0_i32, %c0_i32_0 : i32, i32
  }
  func.func @transform_7(%arg0: i32, %arg1: i32) -> (i32, i32) {
    %c0_i32 = arith.constant 0 : i32
    %c0_i32_0 = arith.constant 0 : i32
    %c0_i32_1 = arith.constant 0 : i32
    return %c0_i32, %c0_i32_0 : i32, i32
  }
  func.func @transform_8(%arg0: i32, %arg1: i32) -> (i32, i32) {
    %c0_i32 = arith.constant 0 : i32
    %c0_i32_0 = arith.constant 0 : i32
    %c0_i32_1 = arith.constant 0 : i32
    return %c0_i32, %c0_i32_0 : i32, i32
  }
  func.func @transform_9(%arg0: i32, %arg1: i32) -> (i32, i32) {
    %c0_i32 = arith.constant 0 : i32
    %c0_i32_0 = arith.constant 0 : i32
    %c0_i32_1 = arith.constant 0 : i32
    return %c0_i32, %c0_i32_0 : i32, i32
  }
  func.func @transform_10(%arg0: i32, %arg1: i32) -> (i32, i32) {
    %c0_i32 = arith.constant 0 : i32
    %c0_i32_0 = arith.constant 0 : i32
    %c0_i32_1 = arith.constant 0 : i32
    return %c0_i32, %c0_i32_0 : i32, i32
  }
  func.func @transform_11(%arg0: i32, %arg1: i32) -> (i32, i32, i32) {
    %c0_i32 = arith.constant 0 : i32
    %c0_i32_0 = arith.constant 0 : i32
    return %arg0, %arg1, %c0_i32 : i32, i32, i32
  }
}

</mosaic_0001>

<bundles_post_ra>
// kernel: tpu_custom_call.1
= control target key start
LH: loop header
LB: loop body
LE: loop exit
PB: predicated region body
PF: predicated region fallthrough
CT: control target
= control target key end

     0   :  { %s3275_s0 = inlined_call_operand.hbm [shape: f32[2,8,32], index: 0, kind: input, shape index: {}]   ;;  %s3276_s1 = inlined_call_operand.hbm [shape: f32[2,8,32], index: 1, kind: input, shape index: {}]   ;;  %s3277_s2 = inlined_call_operand.hbm [shape: f32[2,8,32], index: 2, kind: input, shape index: {}]   ;;  %s3278_s3 = inlined_call_operand.hbm [shape: f32[32,32], index: 3, kind: input, shape index: {}]   ;;  %s3279_s4 = inlined_call_operand.hbm [shape: f32[32,32], index: 4, kind: input, shape index: {}]   ;;  %s3280_s5 = inlined_call_operand.hbm [shape: f32[32,32], index: 5, kind: input, shape index: {}]   ;;  %s3281_s6 = inlined_call_operand.hbm [shape: f32[32,32], index: 6, kind: input, shape index: {}]   ;;  %s3282_s7 = inlined_call_operand.hbm [shape: f32[1,32], index: 7, kind: input, shape index: {}]   ;;  %s3283_s8 = inlined_call_operand.hbm [shape: f32[1,32], index: 8, kind: input, shape index: {}]   ;;  %s3284_s9 = inlined_call_operand.hbm [shape: f32[1,32], index: 9, kind: input, shape index: {}]   ;;  %s3285_s10 = inlined_call_operand.hbm [shape: f32[1,32], index: 10, kind: input, shape index: {}]   ;;  %s3286_s11 = inlined_call_operand.hbm [shape: f32[2,8,32], index: 11, kind: output, shape index: {}]  }
   0x1   :  { %3313 = sst [smem:[#allocation36_spill]] %s3275_s0 }
   0x2   :  { %3314 = sst [smem:[#allocation37_spill]] %s3276_s1 }
   0x3   :  { %3315 = sst [smem:[#allocation38_spill]] %s3277_s2 }
   0x4   :  { %3316 = sst [smem:[#allocation39_spill]] %s3278_s3 }
   0x5   :  { %3317 = sst [smem:[#allocation40_spill]] %s3279_s4 }
   0x6   :  { %3318 = sst [smem:[#allocation41_spill]] %s3280_s5 }
   0x7   :  { %3319 = sst [smem:[#allocation42_spill]] %s3282_s7 }
   0x8   :  { %3320 = sst [smem:[#allocation43_spill]] %s3284_s9 }
   0x9   :  { %3321 = sst [smem:[#allocation44_spill]] %s3286_s11 }
   0xa   :  { %16 = vsyncpa [#allocation4], 0 }
   0xb   :  { %18 = vsyncpa [#allocation4 + $0x1], 0 }
   0xc   :  { %19 = vsyncpa [#allocation7], 0 }
   0xd   :  { %21 = vsyncpa [#allocation7 + $0x1], 0 }
   0xe   :  { %22 = vsyncpa [#allocation10], 0 }
   0xf   :  { %23 = vsyncpa [#allocation13], 0 }
  0x10   :  { %24 = vsyncpa [#allocation16], 0 }
  0x11   :  { %25 = vsyncpa [#allocation19], 0 }
  0x12   :  { %26 = vsyncpa [#allocation5], 0 }
  0x13   :  { %28 = vsyncpa [#allocation5 + $0x1], 0  ;;  %s2718_s17 = smov 0   ;;  %s2720_s18 = smov 0  }
  0x14   :  { %s2722_s19 = smov 0   ;;  %s2724_s20 = smov 0  }
  0x15   :  { %s2726_s21 = smov 0   ;;  %s2728_s22 = smov 0  }
  0x16 LB: > { %3322 = sst [smem:[#allocation29_spill]] %s2625_s20  ;;  %s2749_s23 = sadd.s32 4294967295, %s2633_s22   ;;  %s2633_s22 = sphi %s2728_s22, %s34_s22   ;;  %s2629_s21 = sphi %s2726_s21, %s3375_s21   ;;  %s2625_s20 = sphi %s2724_s20, %s3374_s20   ;;  %s2621_s19 = sphi %s2722_s19, %s3378_s19   ;;  %s2617_s18 = sphi %s2720_s18, %s3377_s18   ;;  %s2613_s17 = sphi %s2718_s17, %s3376_s17  }
  0x17   : > { %3323 = sst [smem:[#allocation30_spill]] %s2629_s21  ;;  %p1840_p0 = scmp.ge.s32.totalorder %s2633_s22, 1 }
  0x18   : > { %3324 = sst [smem:[#allocation31_spill]] %s2633_s22  ;;  %p3291_p1 = scmp.eq.s32.totalorder %s2749_s23, 0 }
  0x19   : > { %p327_p2 = scmp.lt.s32.totalorder %s2633_s22, 3  ;;  %s2635_s25 = smov [#allocation9]  }
  0x1a   : > { %s339_s26 = sshll.u32 %s2635_s25, 4  ;;  %s2636_s28 = smov [#allocation12]   ;;  %s2758_s26 = int_to_ptr.vmem [resolvable:$true] %s339_s26 }
  0x1b   : > { %p2754_p3 = pnand %p1840_p0, %p327_p2  ;;  %s365_s29 = sshll.u32 %s2636_s28, 4  ;;  %s2769_s29 = int_to_ptr.vmem [resolvable:$true] %s365_s29 }
  0x1c   : > { %s2637_s30 = smov [#allocation15]   ;;  %s3328_s3 = sld [smem:[#allocation39_spill]] }
  0x1d   : > { %s3325_s24 = scalar_select %p2754_p3, 1, 0 }
  0x1e   : > { %p2077_p4 = pneg %p2754_p3  ;;  %s2771_s12 = sshll.u32 %s2637_s30, 4  ;;  %s393_s12 = int_to_ptr.vmem [resolvable:$true] %s2771_s12 }
  0x1f   : > { %3326 = sst [smem:[#allocation32_spill]] %s3325_s24 }
  0x20   : > { %p2765_p6 = pnand %p2077_p4, %p3291_p1 }
  0x22   : > { %s3327_s27 = scalar_select %p2765_p6, 1, 0 }
  0x23   : > { %s2217_s15 = scalar_lea.hbm %s3328_s3, 512  ;;  %p2781_p8 = pneg %p2765_p6 }
  0x24   : > { %p2218_p7 = scmp.ne.s32.totalorder %s3328_s3, %s2217_s15  ;;  %p2224_p11 = scmp.lt.u32.totalorder %s2217_s15, %s3328_s3 }
  0x25   : > { %s3329_s11 = scalar_select %p2781_p8, 1, 0 }
  0x26   : > { %p2220_p9 = pnand %p2781_p8, %p2218_p7 }
  0x28   : > { %p2221_p10 = pneg %p2220_p9 }
  0x2a   : > { %p2226_p12 = pnand %p2224_p11, %p2221_p10 }
  0x2c   : > { %2229 = shalt.err (!%p2226_p12)
}
  0x2d   : > { %s2230_s13 = scalar_lea.vmem %s2758_s26, 512  ;;  %p2238_p4 = scmp.lt.s32.totalorder %s2758_s26, %s2758_s26 }
  0x2e   : > { %p2231_p13 = scmp.ne.s32.totalorder %s2758_s26, %s2230_s13  ;;  %p2239_p5 = scmp.lt.s32.totalorder %s2230_s13, %s2230_s13 }
  0x30   : > { %p2233_p0 = pnand %p2231_p13, %p2781_p8  ;;  %p2240_p7 = por %p2239_p5, %p2238_p4 }
  0x32   : > { %p2234_p2 = pneg %p2233_p0 }
  0x34   : > { %p2241_p9 = pnand %p2240_p7, %p2234_p2 }
  0x36   : > { %2244 = shalt.err (!%p2241_p9)
}
  0x37   : > { %s3293_s14 = smov 128   ;;  %s3295_s15 = smov 8  }
  0x38   : > { %2080 = dma.hbm_to_vmem [thread:$0]  (!%p2765_p6), %s3328_s3, 512, %s2758_s26, [#allocation10], %s3293_s14, %s3293_s14, %s3295_s15  }
  0x39   : > { %s3330_s5 = sld [smem:[#allocation41_spill]] }
  0x3f   : > { %s2245_s13 = scalar_lea.hbm %s3330_s5, 512 }
  0x40   : > { %p2246_p5 = scmp.ne.s32.totalorder %s3330_s5, %s2245_s13  ;;  %p2252_p12 = scmp.lt.u32.totalorder %s2245_s13, %s3330_s5 }
  0x42   : > { %p2248_p10 = pnand %p2246_p5, %p2781_p8 }
  0x44   : > { %p2249_p11 = pneg %p2248_p10 }
  0x46   : > { %p2254_p13 = pnand %p2252_p12, %p2249_p11 }
  0x48   : > { %2257 = shalt.err (!%p2254_p13)
}
  0x49   : > { %s2258_s26 = scalar_lea.vmem %s2769_s29, 512  ;;  %p2266_p7 = scmp.lt.s32.totalorder %s2769_s29, %s2769_s29 }
  0x4a   : > { %p2259_p0 = scmp.ne.s32.totalorder %s2769_s29, %s2258_s26  ;;  %p2267_p9 = scmp.lt.s32.totalorder %s2258_s26, %s2258_s26 }
  0x4c   : > { %p2261_p2 = pnand %p2259_p0, %p2781_p8  ;;  %p2268_p5 = por %p2267_p9, %p2266_p7 }
  0x4e   : > { %p2262_p4 = pneg %p2261_p2 }
  0x50   : > { %p2269_p10 = pnand %p2268_p5, %p2262_p4 }
  0x52   : > { %2272 = shalt.err (!%p2269_p10)
}
  0x53   : > { %2086 = dma.hbm_to_vmem [thread:$0]  (!%p2765_p6), %s3330_s5, 512, %s2769_s29, [#allocation13], %s3293_s14, %s3293_s14, %s3295_s15  }
  0x54   : > { %s3331_s7 = sld [smem:[#allocation42_spill]] }
  0x5a   : > { %s2273_s16 = scalar_lea.hbm %s3331_s7, 16 }
  0x5b   : > { %p2274_p11 = scmp.ne.s32.totalorder %s3331_s7, %s2273_s16  ;;  %p2280_p0 = scmp.lt.u32.totalorder %s2273_s16, %s3331_s7 }
  0x5d   : > { %p2276_p12 = pnand %p2274_p11, %p2781_p8 }
  0x5f   : > { %p2277_p13 = pneg %p2276_p12 }
  0x61   : > { %p2282_p2 = pnand %p2280_p0, %p2277_p13 }
  0x63   : > { %2285 = shalt.err (!%p2282_p2)
}
  0x64   : > { %s2286_s26 = scalar_lea.vmem %s393_s12, 16  ;;  %s2293_s29 = scalar_lea.vmem %s393_s12, 32 }
  0x65   : > { %p2287_p4 = scmp.ne.s32.totalorder %s393_s12, %s2286_s26  ;;  %p2294_p5 = scmp.lt.s32.totalorder %s393_s12, %s393_s12 }
  0x66   : > { %p2295_p10 = scmp.lt.s32.totalorder %s2293_s29, %s2286_s26 }
  0x67   : > { %p2289_p7 = pnand %p2287_p4, %p2781_p8 }
  0x68   : > { %p2296_p1 = por %p2295_p10, %p2294_p5 }
  0x69   : > { %p2290_p9 = pneg %p2289_p7 }
  0x6b   : > { %p2297_p3 = pnand %p2296_p1, %p2290_p9 }
  0x6d   : > { %2300 = shalt.err (!%p2297_p3)
}
  0x6e   : > { %2092 = dma.hbm_to_vmem [thread:$0]  (!%p2765_p6), %s3331_s7, 16, %s393_s12, [#allocation16]  }
  0x6f   : > { %s2640_s20 = smov [#allocation18]   ;;  %s3332_s9 = sld [smem:[#allocation43_spill]] }
  0x70   : > { %s414_s24 = sshll.u32 %s2640_s20, 4  ;;  %s415_s24 = int_to_ptr.vmem [resolvable:$true] %s414_s24 }
  0x75   : > { %s2301_s28 = scalar_lea.hbm %s3332_s9, 16 }
  0x76   : > { %p2302_p11 = scmp.ne.s32.totalorder %s3332_s9, %s2301_s28  ;;  %p2308_p12 = scmp.lt.u32.totalorder %s2301_s28, %s3332_s9 }
  0x78   : > { %p2304_p1 = pnand %p2302_p11, %p2781_p8 }
  0x7a   : > { %p2305_p3 = pneg %p2304_p1 }
  0x7c   : > { %p2310_p13 = pnand %p2308_p12, %p2305_p3 }
  0x7e   : > { %2313 = shalt.err (!%p2310_p13)
}
  0x7f   : > { %s2314_s12 = scalar_lea.vmem %s415_s24, 16  ;;  %s2321_s0 = scalar_lea.vmem %s415_s24, 32 }
  0x80   : > { %p2315_p0 = scmp.ne.s32.totalorder %s415_s24, %s2314_s12  ;;  %p2322_p7 = scmp.lt.s32.totalorder %s415_s24, %s415_s24 }
  0x81   : > { %p2323_p9 = scmp.lt.s32.totalorder %s2321_s0, %s2314_s12 }
  0x82   : > { %p2317_p2 = pnand %p2315_p0, %p2781_p8 }
  0x83   : > { %p2324_p5 = por %p2323_p9, %p2322_p7 }
  0x84   : > { %p2318_p4 = pneg %p2317_p2 }
  0x86   : > { %p2325_p10 = pnand %p2324_p5, %p2318_p4 }
  0x88   : > { %2328 = shalt.err (!%p2325_p10)
}
  0x89   : > { %2098 = dma.hbm_to_vmem [thread:$0]  (!%p2765_p6), %s3332_s9, 16, %s415_s24, [#allocation19]  }
  0x8a   : > { %s1839_s16 = sadd.s32 4294967294, %s2633_s22   ;;  %s46_s25 = sadd.s32 1, %s2629_s21 }
  0x8b   : > { %p48_p11 = scmp.ge.s32.totalorder %s46_s25, 2  ;;  %s55_s28 = sadd.s32 1, %s2621_s19 }
  0x8c   : > { %p62_p1 = scmp.ne.s32.totalorder %s2621_s19, %s2617_s18  ;;  %p63_p3 = scmp.eq.s32.totalorder %s2633_s22, 0 }
  0x8d   : > { %s3380_s25 = smov (%p48_p11, %s46_s25), 0  ;;  %p68_p13 = scmp.ne.s32.totalorder %s2617_s18, %s2613_s17 }
  0x8e   : > { %3333 = sst [smem:[#allocation33_spill]] %s3380_s25  ;;  %p2876_p12 = por %p63_p3, %p62_p1 }
  0x8f   : > { %s50_s24 = ssub.s32 %s2629_s21, %s3380_s25  ;;  %p314_p0 = scmp.eq.s32.totalorder %s2749_s23, 1 }
  0x90   : > { %p53_p2 = scmp.eq.s32.totalorder %s50_s24, 0  ;;  %p3335_p4 = scmp.eq.s32.totalorder %s2749_s23, 0 }
  0x91   : > { %p2891_p9 = por %p314_p0, %p62_p1  ;;  %p320_p5 = scmp.eq.s32.totalorder %s1839_s16, 1 }
  0x92   : > { %p2887_p7 = por %p3335_p4, %p68_p13  ;;  %p2124_p11 = scmp.lt.s32.totalorder %s2633_s22, 2 }
  0x93   : > { %s3337_s26 = scalar_select %p2891_p9, 1, 0 }
  0x94   : > { %s3336_s13 = scalar_select %p2887_p7, 1, 0 }
  0x95   : > { %s2896_s29 = scalar_select %p53_p2, %s2621_s19, %s55_s28  }
  0x96   : > { %p2898_p10 = por %p320_p5, %p68_p13  ;;  %s3297_s0 = sand.u32 1, %s2621_s19  }
  0x97   : > { %3338 = sst [smem:[#allocation34_spill]] %s2896_s29  ;;  %s2905_s2 = sshll.u32 %s2629_s21, 7 }
  0x98   : > { %s3339_s12 = scalar_select %p2898_p10, 1, 0 }
  0x99   : > { %s2909_s20 = sshll.u32 %s3297_s0, 3  ;;  %p2913_p1 = pnand %p2124_p11, %p2876_p12 }
  0x9a   : > { %3340 = sst [smem:[#allocation35_spill]] %s3339_s12  ;;  %s455_s16 = sand.u32 1, %s2633_s22  }
  0x9b   : > { %s3341_s24 = scalar_select %p2913_p1, 1, 0 }
  0x9c   : > { %s3342_s1 = sld [smem:[#allocation37_spill]]  ;;  %s459_s3 = scalar_lea.vmem [#allocation6], %s2909_s20 }
  0x9d   : > { %s466_s0 = sshll.u32 %s459_s3, 4  ;;  %s2927_s30 = scalar_lea.sflag [#allocation7], %s455_s16  ;;  %s2925_s0 = int_to_ptr.vmem [resolvable:$true] %s466_s0 }
  0x9e   : > { %p2933_p12 = pneg %p2913_p1 }
  0xa0   : > { %s3343_s7 = scalar_select %p2933_p12, 1, 0 }
  0xa2   : > { %s2922_s15 = scalar_lea.hbm %s3342_s1, %s2905_s2  ;;  %s2334_s9 = scalar_lea.hbm %s3342_s1, 256 }
  0xa3   : > { %s2329_s5 = scalar_lea.hbm %s2922_s15, 128  ;;  %p2335_p2 = scmp.lt.u32.totalorder %s2922_s15, %s3342_s1 }
  0xa4   : > { %p2330_p3 = scmp.ne.s32.totalorder %s2922_s15, %s2329_s5  ;;  %p2336_p4 = scmp.lt.u32.totalorder %s2334_s9, %s2329_s5 }
  0xa5   : > { %p2338_p11 = scmp.lt.u32.totalorder %s2329_s5, %s2922_s15 }
  0xa6   : > { %p2332_p13 = pnand %p2933_p12, %p2330_p3  ;;  %p2337_p5 = por %p2336_p4, %p2335_p2 }
  0xa8   : > { %p2333_p0 = pneg %p2332_p13  ;;  %p2339_p10 = por %p2338_p11, %p2337_p5 }
  0xaa   : > { %p2340_p9 = pnand %p2339_p10, %p2333_p0 }
  0xac   : > { %2343 = shalt.err (!%p2340_p9)
}
  0xad   : > { %s2344_s16 = scalar_lea.vmem %s2925_s0, 128  ;;  %s2641_s14 = smov [#allocation6]  }
  0xae   : > { %p2345_p3 = scmp.ne.s32.totalorder %s2925_s0, %s2344_s16  ;;  %s2349_s28 = sshll.u32 %s2641_s14, 4  ;;  %s2350_s28 = int_to_ptr.vmem [resolvable:$false] %s2349_s28 }
  0xaf   : > { %s2351_s25 = scalar_lea.vmem %s2350_s28, 256  ;;  %p2352_p6 = scmp.lt.s32.totalorder %s2925_s0, %s2350_s28 }
  0xb0   : > { %p2347_p13 = pnand %p2345_p3, %p2933_p12  ;;  %p2353_p8 = scmp.lt.s32.totalorder %s2351_s25, %s2344_s16 }
  0xb2   : > { %p2348_p7 = pneg %p2347_p13  ;;  %p2354_p2 = por %p2353_p8, %p2352_p6 }
  0xb4   : > { %p2355_p4 = pnand %p2354_p2, %p2348_p7 }
  0xb6   : > { %2358 = shalt.err (!%p2355_p4)
}
  0xb7   : > { %2108 = dma.hbm_to_vmem [thread:$0]  (!%p2913_p1), %s2922_s15, 128, %s2925_s0, %s2927_s30  }
  0xb8   : > { %s2642_s5 = smov [#allocation11]   ;;  %s2643_s3 = smov [#allocation14]  }
  0xb9   : > { %s352_s9 = sshll.u32 %s2642_s5, 4  ;;  %s378_s1 = sshll.u32 %s2643_s3, 4  ;;  %s353_s9 = int_to_ptr.vmem [resolvable:$true] %s352_s9  ;;  %s379_s1 = int_to_ptr.vmem [resolvable:$true] %s378_s1 }
  0xba   : > { %s3344_s4 = sld [smem:[#allocation40_spill]]  ;;  %p3345_p8 = scmp.ne.s32.totalorder %s3329_s11, 0 }
  0xc0   : > { %s2359_s28 = scalar_lea.hbm %s3344_s4, 512 }
  0xc1   : > { %p2360_p6 = scmp.ne.s32.totalorder %s3344_s4, %s2359_s28  ;;  %p2366_p10 = scmp.lt.u32.totalorder %s2359_s28, %s3344_s4 }
  0xc3   : > { %p2362_p7 = pnand %p2360_p6, %p3345_p8 }
  0xc5   : > { %p2363_p9 = pneg %p2362_p7 }
  0xc7   : > { %p2368_p0 = pnand %p2366_p10, %p2363_p9 }
  0xc9   : > { %2371 = shalt.err (!%p2368_p0)
}
  0xca   : > { %s2372_s15 = scalar_lea.vmem %s353_s9, 512  ;;  %p2380_p13 = scmp.lt.s32.totalorder %s353_s9, %s353_s9 }
  0xcb   : > { %p2373_p5 = scmp.ne.s32.totalorder %s353_s9, %s2372_s15  ;;  %p2381_p2 = scmp.lt.s32.totalorder %s2372_s15, %s2372_s15 }
  0xcd   : > { %p2375_p11 = pnand %p2373_p5, %p3345_p8  ;;  %p2382_p4 = por %p2381_p2, %p2380_p13 }
  0xcf   : > { %p2376_p3 = pneg %p2375_p11 }
  0xd1   : > { %p2383_p1 = pnand %p2382_p4, %p2376_p3 }
  0xd3   : > { %2386 = shalt.err (!%p2383_p1)
}
  0xd4   : > { %p3346_p6 = scmp.ne.s32.totalorder %s3327_s27, 0  ;;  %s3347_s21 = smov 8  }
  0xd5   : > { %s3348_s0 = smov 128   ;;  %s2387_s14 = scalar_lea.hbm %s3281_s6, 512 }
  0xd6   : > { %2083 = dma.hbm_to_vmem [thread:$0]  (!%p3346_p6), %s3344_s4, 512, %s353_s9, [#allocation10], %s3348_s0, %s3348_s0, %s3347_s21  }
  0xd7   : > { %p2388_p7 = scmp.ne.s32.totalorder %s3281_s6, %s2387_s14  ;;  %p2394_p10 = scmp.lt.u32.totalorder %s2387_s14, %s3281_s6 }
  0xd9   : > { %p2390_p1 = pnand %p2388_p7, %p3345_p8 }
  0xdb   : > { %p2391_p9 = pneg %p2390_p1 }
  0xdd   : > { %p2396_p0 = pnand %p2394_p10, %p2391_p9 }
  0xdf   : > { %2399 = shalt.err (!%p2396_p0)
}
  0xe0   : > { %s2400_s22 = scalar_lea.vmem %s379_s1, 512  ;;  %p2408_p13 = scmp.lt.s32.totalorder %s379_s1, %s379_s1 }
  0xe1   : > { %p2401_p5 = scmp.ne.s32.totalorder %s379_s1, %s2400_s22  ;;  %p2409_p2 = scmp.lt.s32.totalorder %s2400_s22, %s2400_s22 }
  0xe3   : > { %p2403_p11 = pnand %p2401_p5, %p3345_p8  ;;  %p2410_p4 = por %p2409_p2, %p2408_p13 }
  0xe5   : > { %p2404_p3 = pneg %p2403_p11 }
  0xe7   : > { %p2411_p12 = pnand %p2410_p4, %p2404_p3 }
  0xe9   : > { %2414 = shalt.err (!%p2411_p12)
}
  0xea   : > { %2089 = dma.hbm_to_vmem [thread:$0]  (!%p3346_p6), %s3281_s6, 512, %s379_s1, [#allocation13], %s3348_s0, %s3348_s0, %s3347_s21  }
  0xeb   : > { %s2644_s5 = smov [#allocation17]   ;;  %s2645_s14 = smov [#allocation20]  }
  0xec   : > { %s403_s3 = sshll.u32 %s2644_s5, 4  ;;  %s425_s28 = sshll.u32 %s2645_s14, 4  ;;  %s404_s3 = int_to_ptr.vmem [resolvable:$true] %s403_s3  ;;  %s426_s28 = int_to_ptr.vmem [resolvable:$true] %s425_s28 }
  0xed   : > { %s2415_s15 = scalar_lea.hbm %s3283_s8, 16 }
  0xee   : > { %p2416_p12 = scmp.ne.s32.totalorder %s3283_s8, %s2415_s15  ;;  %p2422_p9 = scmp.lt.u32.totalorder %s2415_s15, %s3283_s8 }
  0xf0   : > { %p2418_p7 = pnand %p2416_p12, %p3345_p8 }
  0xf2   : > { %p2419_p1 = pneg %p2418_p7 }
  0xf4   : > { %p2424_p10 = pnand %p2422_p9, %p2419_p1 }
  0xf6   : > { %2427 = shalt.err (!%p2424_p10)
}
  0xf7   : > { %s2428_s1 = scalar_lea.vmem %s404_s3, 16  ;;  %s2435_s21 = scalar_lea.vmem %s404_s3, 32 }
  0xf8   : > { %p2429_p0 = scmp.ne.s32.totalorder %s404_s3, %s2428_s1  ;;  %p2436_p3 = scmp.lt.s32.totalorder %s404_s3, %s404_s3 }
  0xf9   : > { %p2437_p13 = scmp.lt.s32.totalorder %s2435_s21, %s2428_s1 }
  0xfa   : > { %p2431_p5 = pnand %p2429_p0, %p3345_p8 }
  0xfb   : > { %p2438_p2 = por %p2437_p13, %p2436_p3 }
  0xfc   : > { %p2432_p11 = pneg %p2431_p5 }
  0xfe   : > { %p2439_p4 = pnand %p2438_p2, %p2432_p11 }
 0x100   : > { %2442 = shalt.err (!%p2439_p4)
}
 0x101   : > { %2095 = dma.hbm_to_vmem [thread:$0]  (!%p3346_p6), %s3283_s8, 16, %s404_s3, [#allocation16]  }
 0x102   : > { %s2443_s5 = scalar_lea.hbm %s3285_s10, 16 }
 0x103   : > { %p2444_p12 = scmp.ne.s32.totalorder %s3285_s10, %s2443_s5  ;;  %p2450_p9 = scmp.lt.u32.totalorder %s2443_s5, %s3285_s10 }
 0x105   : > { %p2446_p7 = pnand %p2444_p12, %p3345_p8 }
 0x107   : > { %p2447_p1 = pneg %p2446_p7 }
 0x109   : > { %p2452_p10 = pnand %p2450_p9, %p2447_p1 }
 0x10b   : > { %2455 = shalt.err (!%p2452_p10)
}
 0x10c   : > { %s2456_s22 = scalar_lea.vmem %s426_s28, 16  ;;  %s2463_s3 = scalar_lea.vmem %s426_s28, 32 }
 0x10d   : > { %p2457_p0 = scmp.ne.s32.totalorder %s426_s28, %s2456_s22  ;;  %p2464_p3 = scmp.lt.s32.totalorder %s426_s28, %s426_s28 }
 0x10e   : > { %p2465_p13 = scmp.lt.s32.totalorder %s2463_s3, %s2456_s22 }
 0x10f   : > { %p2459_p5 = pnand %p2457_p0, %p3345_p8 }
 0x110   : > { %p2466_p2 = por %p2465_p13, %p2464_p3 }
 0x111   : > { %p2460_p11 = pneg %p2459_p5 }
 0x113   : > { %p2467_p4 = pnand %p2466_p2, %p2460_p11 }
 0x115   : > { %2470 = shalt.err (!%p2467_p4)
}
 0x116   : > { %2101 = dma.hbm_to_vmem [thread:$0]  (!%p3346_p6), %s3285_s10, 16, %s426_s28, [#allocation19]  }
 0x117   : > { %s3349_s4 = sld [smem:[#allocation36_spill]]  ;;  %s440_s12 = scalar_lea.vmem [#allocation3], %s2909_s20 }
 0x118   : > { %s448_s27 = sshll.u32 %s440_s12, 4  ;;  %s3350_s14 = sld [smem:[#allocation38_spill]]  ;;  %s3042_s27 = int_to_ptr.vmem [resolvable:$true] %s448_s27 }
 0x119   : > { %s3351_s25 = sand.u32 1, %s2621_s19   ;;  %p3352_p6 = scmp.ne.s32.totalorder %s3343_s7, 0 }
 0x11a   : > { %s437_s28 = scalar_lea.sflag [#allocation4], %s3351_s25 }
 0x11d   : > { %s3039_s0 = scalar_lea.hbm %s3349_s4, %s2905_s2  ;;  %s2476_s9 = scalar_lea.hbm %s3349_s4, 256 }
 0x11e   : > { %s3048_s16 = scalar_lea.hbm %s3350_s14, %s2905_s2  ;;  %s2471_s15 = scalar_lea.hbm %s3039_s0, 128 }
 0x11f   : > { %p2472_p8 = scmp.ne.s32.totalorder %s3039_s0, %s2471_s15  ;;  %p2477_p1 = scmp.lt.u32.totalorder %s3039_s0, %s3349_s4 }
 0x120   : > { %p2478_p9 = scmp.lt.u32.totalorder %s2476_s9, %s2471_s15  ;;  %p2480_p0 = scmp.lt.u32.totalorder %s2471_s15, %s3039_s0 }
 0x121   : > { %p2474_p12 = pnand %p2472_p8, %p3352_p6 }
 0x122   : > { %p2479_p10 = por %p2478_p9, %p2477_p1 }
 0x123   : > { %p2475_p7 = pneg %p2474_p12 }
 0x124   : > { %p2481_p5 = por %p2480_p0, %p2479_p10 }
 0x126   : > { %p2482_p11 = pnand %p2481_p5, %p2475_p7 }
 0x128   : > { %2485 = shalt.err (!%p2482_p11)
}
 0x129   : > { %s2486_s2 = scalar_lea.vmem %s3042_s27, 128  ;;  %s2646_s21 = smov [#allocation3]  }
 0x12a   : > { %p2487_p3 = scmp.ne.s32.totalorder %s3042_s27, %s2486_s2  ;;  %s2491_s12 = sshll.u32 %s2646_s21, 4  ;;  %s2492_s12 = int_to_ptr.vmem [resolvable:$false] %s2491_s12 }
 0x12b   : > { %s2493_s29 = scalar_lea.vmem %s2492_s12, 256  ;;  %p2494_p4 = scmp.lt.s32.totalorder %s3042_s27, %s2492_s12 }
 0x12c   : > { %p2489_p13 = pnand %p2487_p3, %p3352_p6  ;;  %p2495_p8 = scmp.lt.s32.totalorder %s2493_s29, %s2486_s2 }
 0x12e   : > { %p2490_p2 = pneg %p2489_p13  ;;  %p2496_p12 = por %p2495_p8, %p2494_p4 }
 0x130   : > { %p2497_p1 = pnand %p2496_p12, %p2490_p2 }
 0x132   : > { %2500 = shalt.err (!%p2497_p1)
}
 0x133   : > { %p3353_p7 = scmp.ne.s32.totalorder %s3341_s24, 0  ;;  %s477_s5 = scalar_lea.vmem [#allocation8], %s2909_s20 }
 0x134   : > { %s484_s25 = sshll.u32 %s477_s5, 4  ;;  %s2501_s15 = scalar_lea.hbm %s3048_s16, 128  ;;  %s485_s25 = int_to_ptr.vmem [resolvable:$true] %s484_s25 }
 0x135   : > { %2105 = dma.hbm_to_vmem [thread:$0]  (!%p3353_p7), %s3039_s0, 128, %s3042_s27, %s437_s28  }
 0x136   : > { %p2502_p9 = scmp.ne.s32.totalorder %s3048_s16, %s2501_s15  ;;  %s2506_s9 = scalar_lea.hbm %s3350_s14, 256 }
 0x137   : > { %p2507_p5 = scmp.lt.u32.totalorder %s3048_s16, %s3350_s14  ;;  %p2508_p11 = scmp.lt.u32.totalorder %s2506_s9, %s2501_s15 }
 0x138   : > { %p2504_p10 = pnand %p2502_p9, %p3352_p6  ;;  %p2510_p13 = scmp.lt.u32.totalorder %s2501_s15, %s3048_s16 }
 0x139   : > { %p2509_p3 = por %p2508_p11, %p2507_p5 }
 0x13a   : > { %p2505_p0 = pneg %p2504_p10 }
 0x13b   : > { %p2511_p2 = por %p2510_p13, %p2509_p3 }
 0x13d   : > { %p2512_p4 = pnand %p2511_p2, %p2505_p0 }
 0x13f   : > { %2515 = shalt.err (!%p2512_p4)
}
 0x140   : > { %s2516_s20 = scalar_lea.vmem %s485_s25, 128  ;;  %s2647_s0 = smov [#allocation8]  }
 0x141   : > { %p2517_p8 = scmp.ne.s32.totalorder %s485_s25, %s2516_s20  ;;  %s2521_s27 = sshll.u32 %s2647_s0, 4  ;;  %s2522_s27 = int_to_ptr.vmem [resolvable:$false] %s2521_s27 }
 0x142   : > { %s2523_s28 = scalar_lea.vmem %s2522_s27, 256  ;;  %p2524_p9 = scmp.lt.s32.totalorder %s485_s25, %s2522_s27 }
 0x143   : > { %p2519_p12 = pnand %p2517_p8, %p3352_p6  ;;  %p2525_p10 = scmp.lt.s32.totalorder %s2523_s28, %s2516_s20 }
 0x145   : > { %p2520_p1 = pneg %p2519_p12  ;;  %p2526_p7 = por %p2525_p10, %p2524_p9 }
 0x147   : > { %p2527_p5 = pnand %p2526_p7, %p2520_p1 }
 0x149   : > { %2530 = shalt.err (!%p2527_p5)
}
 0x14a   : > { %p3354_p11 = scmp.ne.s32.totalorder %s3341_s24, 0  ;;  %s3355_s2 = sld [smem:[#allocation32_spill]] }
 0x14c   : > { %2111 = dma.hbm_to_vmem [thread:$0]  (!%p3354_p11), %s3048_s16, 128, %s485_s25, %s2927_s30  }
 0x150   : > { %p3356_p0 = scmp.ne.s32.totalorder %s3355_s2, 0 }
 0x151   : > { %s3095_s7 = sand.u32 (!%p3356_p0), 1, %s2617_s18   ;;  %p3357_p6 = scmp.ne.s32.totalorder (!%p3356_p0), %s3336_s13, 0 }
 0x152   : > { %493 = sbr.rel (%p3356_p0) target bundleno = 2275 (0x8e3), region = 64  ;;  %s3098_s21 = sshll.u32 (!%p3356_p0), %s3095_s7, 3 }
 0x153   : > { %s496_s12 = scalar_lea.sflag (!%p3356_p0), [#allocation4], %s3095_s7  ;;  %s499_s29 = scalar_lea.vmem (!%p3356_p0), [#allocation3], %s3098_s21 }
 0x159   : > { %2584 = dma.done.wait (%p3357_p6), %s496_s12, 128  }
 0x15a   : > { %2586 = vsyncadd (%p3357_p6), %s496_s12, 4294967168  ;;  %s504_s24 = sand.u32 1, %s2749_s23   ;;  %s508_s16 = scalar_lea.vmem [#allocation6], %s3098_s21 }
 0x15b   : > { %s505_s30 = scalar_lea.sflag [#allocation7], %s504_s24 }
 0x15c   : > { %2588 = dma.done.wait (%p3357_p6), %s505_s30, 256  }
 0x15d   : > { %2590 = vsyncadd (%p3357_p6), %s505_s30, 4294967040  ;;  %s517_s5 = scalar_lea.vmem [#allocation8], %s3098_s21  ;;  %p3358_p7 = scmp.eq.s32.totalorder %s2749_s23, 0 }
 0x15f   : > { %2592 = dma.done.wait (%p3358_p7), [#allocation10], 1024   ;;  %p3359_p3 = pmov %p3358_p7 }
 0x161   : > { %2594 = vsyncadd (%p3359_p3), [#allocation10], 4294966272  ;;  %p3360_p13 = pmov %p3359_p3 }
 0x162   : > { %p3361_p2 = pmov %p3359_p3 }
 0x163   : > { %2596 = dma.done.wait (%p3360_p13), [#allocation13], 1024  }
 0x164   : > { %2598 = vsyncadd (%p3361_p2), [#allocation13], 4294966272  ;;  %p3362_p4 = pmov %p3361_p2 }
 0x165   : > { %p3363_p8 = pmov %p3361_p2 }
 0x166   : > { %2600 = dma.done.wait (%p3362_p4), [#allocation16], 32  }
 0x167   : > { %2602 = vsyncadd (%p3363_p8), [#allocation16], 4294967264  ;;  %p3364_p12 = pmov %p3361_p2 }
 0x168   : > { %p3365_p1 = pmov %p3361_p2 }
 0x169   : > { %2604 = dma.done.wait (%p3364_p12), [#allocation19], 32  }
 0x16a   : > { %2606 = vsyncadd (%p3365_p1), [#allocation19], 4294967264  ;;  %v2648_v0 = vmov 0.0|0.0   ;;  %vm2649_vm0 = vmmov 0   ;;  %v2650_v1 = vmov 0.0   ;;  %v603_v2 = vld [vmem:[#allocation11] sm:$0xff] }
 0x16b   : > { %2013 = vmatprep.subr.bf16.mxu0 %v2648_v0  ;;  %1937 = vmatprep.mubr.msk.f32.mxu0 %vm2649_vm0, %v2650_v1  ;;  %v604_v3 = vld [vmem:[#allocation11 + $0x8] sm:$0xff]  ;;  %v605_v4 = vld [vmem:[#allocation11 + $0x10] sm:$0xff]  ;;  %v606_v6 = vld [vmem:[#allocation11 + $0x18] sm:$0xff]  ;;  %vm614_vm1 = vcmask 261120   ;;  %vm865_vm2 = vcmask 64512   ;;  %s2651_s23 = smov 120  }
 0x16c   : > { %2019 = vmatprep.subr.bf16.mxu1 %v2648_v0  ;;  %1948 = vmatprep.mubr.msk.f32.mxu1 %vm2649_vm0, %v2650_v1  ;;  %v2014_v5 = vpack.c.bf16 %v604_v3, %v603_v2  ;;  %v2017_v7 = vpack.c.bf16 %v606_v6, %v605_v4  ;;  %v689_v8 = vld [vmem:[#allocation12] sm:$0xff]  ;;  %v690_v9 = vld [vmem:[#allocation12 + $0x8] sm:$0xff]  ;;  %v779_v15 = vld [vmem:[#allocation9 + $0x10] sm:$0xff]  ;;  %s2652_s13 = smov 112   ;;  %s2653_s25 = smov 104   ;;  %vm1535_vm3 = vcmask 130048  }
 0x16d   : > { %v777_v10 = vld [vmem:[#allocation9] sm:$0xff]  ;;  %v778_v11 = vld [vmem:[#allocation9 + $0x8] sm:$0xff]  ;;  %v2020_v12 = vpack.c.bf16 %v690_v9, %v689_v8  ;;  %v780_v16 = vld [vmem:[#allocation9 + $0x18] sm:$0xff]  ;;  %s2654_s15 = smov 8   ;;  %s2655_s22 = smov 16   ;;  %vm1537_vm4 = vcmask 195584  }
 0x16e   : > { %2015 = vmatpush3.bf16.msra.mxu0 %v2014_v5  ;;  %v602_v13 = vld [vmem:[%s508_s16] sm:$0xff]  ;;  %v2026_v14 = vpack.c.bf16 %v778_v11, %v777_v10  ;;  %v2029_v17 = vpack.c.bf16 %v780_v16, %v779_v15  ;;  %v776_v18 = vld [vmem:[%s499_s29] sm:$0xff]  ;;  %s3366_s3 = sld [smem:[#allocation29_spill]]  ;;  %s2656_s9 = smov 24  }
 0x16f   : > { %2016 = vmatprep.subr.bf16.mxu0 %v2648_v0  ;;  %2021 = vmatpush3.bf16.msra.mxu1 %v2020_v12  ;;  %v691_v19 = vld [vmem:[#allocation12 + $0x10] sm:$0xff]  ;;  %v692_v20 = vld [vmem:[#allocation12 + $0x18] sm:$0xff]  ;;  %v1869_v23 = vld [vmem:[#allocation17] ss:$0 sm:$0xff]  ;;  %s597_s11 = scalar_lea.vmem [#allocation21], %s3098_s21  ;;  %s3367_s28 = sld [smem:[#allocation44_spill]] }
 0x170   : > { %2022 = vmatprep.subr.bf16.mxu1 %v2648_v0  ;;  %v2023_v21 = vpack.c.bf16 %v692_v20, %v691_v19  ;;  %v688_v22 = vld [vmem:[%s517_s5] sm:$0xff]  ;;  %v1873_v27 = vld [vmem:[#allocation15] ss:$0 sm:$0xff]  ;;  %v1871_v32 = vld [vmem:[#allocation18] ss:$0 sm:$0xff]  ;;  %s1639_s20 = sshll.u32 %s597_s11, 4  ;;  %s3227_s20 = int_to_ptr.vmem [resolvable:$true] %s1639_s20 }
 0x171   : > { %s1625_s12 = scalar_lea.sflag [#allocation5], %s3095_s7  ;;  %s2531_s29 = scalar_lea.vmem %s3227_s20, 128 }
 0x172   : > { %2018 = vmatpush3.bf16.msra.mxu0 %v2017_v7  ;;  %p2532_p9 = scmp.ne.s32.totalorder %s3227_s20, %s2531_s29  ;;  %p3368_p10 = scmp.ne.s32.totalorder %s3337_s26, 0 }
 0x173   : > { %2025 = vmatprep.subr.bf16.mxu0 %v2648_v0  ;;  %2024 = vmatpush3.bf16.msra.mxu1 %v2023_v21  ;;  %s2657_s21 = smov [#allocation21]  }
 0x174   : > { %1962 = vmatprep.subr.mxu1 %v2650_v1  ;;  %s1890_s1 = sshll.u32 %s3366_s3, 7  ;;  %p2533_p5 = pnand %p2532_p9, %p3368_p10 }
 0x175   : > { %1938 = vmatmul.mubr.msk.f32.vlgmr.msra.gmra.mrb[0].mxu0 %vm614_vm1, %v602_v13  ;;  %s3225_s2 = scalar_lea.hbm %s3367_s28, %s1890_s1  ;;  %s2535_s24 = sshll.u32 %s2657_s21, 4  ;;  %s2536_s24 = int_to_ptr.vmem [resolvable:$false] %s2535_s24 }
 0x176   : > { %2027 = vmatpush3.bf16.msra.mxu0 %v2026_v14  ;;  %1959 = vmatprep.mubr.msk.f32.mxu0 %vm2649_vm0, %v2650_v1  ;;  %p2534_p11 = pneg %p2533_p5  ;;  %s2537_s30 = scalar_lea.vmem %s2536_s24, 256 }
 0x177   : > { %2028 = vmatprep.subr.bf16.mxu0 %v2648_v0  ;;  %1949 = vmatmul.mubr.msk.f32.vlgmr.msra.gmra.mrb[0].mxu1 %vm614_vm1, %v688_v22  ;;  %p2538_p0 = scmp.lt.s32.totalorder %s3227_s20, %s2536_s24  ;;  %p2539_p6 = scmp.lt.s32.totalorder %s2537_s30, %s2531_s29 }
 0x178   : > { %1964 = vmatprep.mubr.msk.f32.mxu1 %vm2649_vm0, %v2650_v1 }
 0x179   : > { %p2540_p7 = por %p2539_p6, %p2538_p0 }
 0x17a   : > { %2030 = vmatpush3.bf16.msra.mxu0 %v2029_v17 }
 0x17b   : > { %1982 = vmatprep.subr.mxu0 %v2650_v1  ;;  %p2541_p3 = pnand %p2540_p7, %p2534_p11 }
 0x17d   : > { %1960 = vmatmul.mubr.msk.f32.vlgmr.msra.gmra.mrb[2].mxu0 %vm614_vm1, %v776_v18 }
 0x17e   : > { %1984 = vmatprep.mubr.msk.f32.mxu0 %vm2649_vm0, %v2650_v1 }
 0x248   : > { %v684_v24 = vpop.f32.mrb[0].mxu0 }
 0x249   : > { %v685_v25 = vadd.f32 %v1869_v23, %v684_v24  ;;  %v1939_v26 = vpop.f32.mrb[1].mxu0 }
 0x24a   : > { %v769_v33 = vpop.f32.mrb[0].mxu1 }
 0x24b   : > { %773 = vst.msk [vmem:[#allocation2] sm:$0xff] %vm614_vm1, %v685_v25  ;;  %v770_v34 = vadd.f32 %v1871_v32, %v769_v33  ;;  %v1950_v35 = vpop.f32.mrb[1].mxu1  ;;  %v1541_v33 = vld [vmem:[#allocation14 + $0x10] sm:$0xff] }
 0x24d   : > { %775 = vst.msk [vmem:[#allocation2 + $0x8] sm:$0xff] %vm614_vm1, %v770_v34  ;;  %v1542_v34 = vld [vmem:[#allocation14 + $0x18] sm:$0xff] }
 0x24e   : > { %v2035_v35 = vpack.c.bf16 %v1542_v34, %v1541_v33 }
 0x250   : > { %v858_v28 = vpop.f32.mrb[2].mxu0 }
 0x251   : > { %v1961_v29 = vpop.f32.mrb[3].mxu0  ;;  %v859_v31 = vadd.f32 %v1873_v27, %v858_v28 }
 0x252   : > { %v862_v30 = vld [vmem:[#allocation2] sm:$0xff] }
 0x253   : > { %1028 = vrot.lane.b32.xlu1 %v862_v30, %s2651_s23  ;;  %1963 = vmatpush3.xpose.msk.msra.mxu1 %vm865_vm2, %v862_v30 }
 0x254   : > { %1967 = vmatprep.subr.mxu1 %v2650_v1  ;;  %v3168_v36 = vld [vmem:[#allocation2 + $0x8] sm:$0xff] }
 0x256   : > { %1965 = vmatmul.mubr.msk.f32.vlgmr.msra.gmra.mrb[2].mxu1 %vm865_vm2, %v859_v31 }
 0x257   : > { %1026 = vrot.lane.b32.xlu1 %v859_v31, %s2651_s23  ;;  %1969 = vmatprep.mubr.msk.f32.mxu1 %vm2649_vm0, %v2650_v1 }
 0x258   : > { %1968 = vmatpush3.msra.mxu1 %v3168_v36 }
 0x259   : > { %1972 = vmatprep.subr.mxu1 %v2650_v1 }
 0x25b   : > { %1192 = vrot.lane.b32.xlu1 %v859_v31, %s2652_s13 }
 0x25f   : > { %1359 = vrot.lane.b32.xlu1 %v862_v30, %s2653_s25 }
 0x263   : > { %1357 = vrot.lane.b32.xlu1 %v859_v31, %s2653_s25  ;;  %v1540_v31 = vld [vmem:[#allocation14 + $0x8] sm:$0xff] }
 0x2c5   : > { %v1029_v45 = vpop.permute.xlu1 %1028 }
 0x2c9   : > { %v1027_v46 = vpop.permute.xlu1 %1026 }
 0x2cd   : > { %v1193_v47 = vpop.permute.xlu1 %1192 }
 0x2d1   : > { %v1360_v50 = vpop.permute.xlu1 %1359 }
 0x2d5   : > { %v1358_v52 = vpop.permute.xlu1 %1357 }
 0x329   : > { %v938_v37 = vpop.f32.mrb[2].mxu1 }
 0x32a   : > { %v1966_v38 = vpop.f32.mrb[3].mxu1  ;;  %v942_v39 = vsel %vm865_vm2, %v938_v37, -inf }
 0x32b   : > { %943 = vmax.xlane.f32.xlu0 %v942_v39 }
 0x3b8   : > { %v944_v40 = vpop.xlane.xlu0 %943 }
 0x3b9   : > { %v945_v41 = vsub.f32 %v938_v37, %v944_v40 }
 0x3bb   : > { %v946_v42 = vmul.f32 1.442695, %v945_v41 }
 0x3bd   : > { %2201 = vpow2.f32 %v946_v42 }
 0x3c7   : > { %v2202_v43 = vpop.eup %2201 }
 0x3c8   : > { %v948_v44 = vsel %vm865_vm2, %v2202_v43, 0.0 }
 0x3c9   : > { %949 = vadd.xlane.f32.xlu0 %v948_v44 }
 0x3df   : > { %1194 = vrot.lane.b32.xlu0 %v862_v30, %s2652_s13  ;;  %v1539_v30 = vld [vmem:[#allocation14] sm:$0xff] }
 0x3e0   : > { %v2032_v32 = vpack.c.bf16 %v1540_v31, %v1539_v30 }
 0x456   : > { %v950_v48 = vpop.xlane.xlu0 %949 }
 0x457   : > { %2203 = vrcp.f32 %v950_v48 }
 0x45a   : > { %v1195_v49 = vpop.permute.xlu0 %1194 }
 0x45b   : > { %1983 = vmatpush3.xpose.msk.msra.mxu0 %vm865_vm2, %v1195_v49 }
 0x45c   : > { %1992 = vmatprep.subr.mxu0 %v2650_v1 }
 0x45e   : > { %1985 = vmatmul.mubr.msk.f32.vlgmr.msra.gmra.mrb[4].mxu0 %vm865_vm2, %v1193_v47 }
 0x45f   : > { %1993 = vmatpush3.xpose.msk.msra.mxu0 %vm865_vm2, %v1360_v50  ;;  %1994 = vmatprep.mubr.msk.f32.mxu0 %vm2649_vm0, %v2650_v1 }
 0x460   : > { %2031 = vmatprep.subr.bf16.mxu0 %v2648_v0 }
 0x461   : > { %v2204_v51 = vpop.eup %2203 }
 0x462   : > { %v952_v53 = vmul.f32 %v2204_v51, %v2202_v43  ;;  %1995 = vmatmul.mubr.msk.f32.vlgmr.msra.gmra.mrb[6].mxu0 %vm865_vm2, %v1358_v52 }
 0x463   : > { %2010 = vmatprep.mubr.msk.f32.mxu0 %vm2649_vm0, %v2650_v1  ;;  %2033 = vmatpush3.bf16.msra.mxu0 %v2032_v32 }
 0x464   : > { %1970 = vmatmul.mubr.msk.f32.vlgmr.msra.gmra.mrb[4].mxu1 %vm865_vm2, %v952_v53  ;;  %2034 = vmatprep.subr.bf16.mxu0 %v2648_v0 }
 0x465   : > { %1973 = vmatpush3.xpose.msk.msra.mxu1 %vm865_vm2, %v1029_v45  ;;  %1974 = vmatprep.mubr.msk.f32.mxu1 %vm2649_vm0, %v2650_v1 }
 0x466   : > { %1977 = vmatprep.subr.mxu1 %v2650_v1 }
 0x467   : > { %2036 = vmatpush3.bf16.msra.mxu0 %v2035_v35 }
 0x468   : > { %1975 = vmatmul.mubr.msk.f32.vlgmr.msra.gmra.mrb[6].mxu1 %vm865_vm2, %v1027_v46  ;;  %v1887_v46 = vld [vmem:[#allocation20] ss:$0 sm:$0xff] }
 0x469   : > { %1979 = vmatprep.mubr.msk.f32.mxu1 %vm2649_vm0, %v2650_v1 }
 0x531   : > { %v1266_v54 = vpop.f32.mrb[4].mxu0 }
 0x532   : > { %v1986_v55 = vpop.f32.mrb[5].mxu0  ;;  %v1270_v56 = vsel %vm865_vm2, %v1266_v54, -inf }
 0x533   : > { %1271 = vmax.xlane.f32.xlu0 %v1270_v56 }
 0x535   : > { %v1431_v57 = vpop.f32.mrb[6].mxu0 }
 0x536   : > { %v1996_v58 = vpop.f32.mrb[7].mxu0  ;;  %v1435_v2 = vsel %vm865_vm2, %v1431_v57, -inf }
 0x537   : > { %v3194_v59 = vpop.f32.mrb[4].mxu1 }
 0x538   : > { %v1971_v60 = vpop.f32.mrb[5].mxu1 }
 0x53b   : > { %v1100_v61 = vpop.f32.mrb[6].mxu1 }
 0x53c   : > { %v1976_v62 = vpop.f32.mrb[7].mxu1  ;;  %v1104_v63 = vsel %vm865_vm2, %v1100_v61, -inf }
 0x53d   : > { %1105 = vmax.xlane.f32.xlu1 %v1104_v63 }
 0x541   : > { %1436 = vmax.xlane.f32.xlu1 %v1435_v2 }
 0x5c0   : > { %v1272_v3 = vpop.xlane.xlu0 %1271 }
 0x5c1   : > { %v1273_v4 = vsub.f32 %v1266_v54, %v1272_v3 }
 0x5c3   : > { %v1274_v5 = vmul.f32 1.442695, %v1273_v4 }
 0x5c5   : > { %2205 = vpow2.f32 %v1274_v5 }
 0x5ca   : > { %v1106_v6 = vpop.xlane.xlu1 %1105 }
 0x5cb   : > { %v1107_v14 = vsub.f32 %v1100_v61, %v1106_v6 }
 0x5cd   : > { %v1108_v15 = vmul.f32 1.442695, %v1107_v14 }
 0x5ce   : > { %v1437_v7 = vpop.xlane.xlu1 %1436 }
 0x5cf   : > { %v2206_v8 = vpop.eup %2205  ;;  %v1438_v9 = vsub.f32 %v1431_v57, %v1437_v7 }
 0x5d0   : > { %v1276_v10 = vsel %vm865_vm2, %v2206_v8, 0.0 }
 0x5d1   : > { %v1439_v11 = vmul.f32 1.442695, %v1438_v9  ;;  %1277 = vadd.xlane.f32.xlu0 %v1276_v10 }
 0x5d3   : > { %2207 = vpow2.f32 %v1439_v11 }
 0x5d4   : > { %2209 = vpow2.f32 %v1108_v15 }
 0x5dd   : > { %v2208_v12 = vpop.eup %2207 }
 0x5de   : > { %v1441_v13 = vsel %vm865_vm2, %v2208_v12, 0.0  ;;  %v2210_v16 = vpop.eup %2209 }
 0x5df   : > { %1442 = vadd.xlane.f32.xlu1 %v1441_v13  ;;  %v1110_v17 = vsel %vm865_vm2, %v2210_v16, 0.0 }
 0x5e7   : > { %1116 = vrot.lane.b32.xlu0 %v3168_v36, %s2651_s23 }
 0x5f0   : > { %1281 = vrot.lane.b32.xlu1 %v3168_v36, %s2652_s13 }
 0x614   : > { %1111 = vadd.xlane.f32.xlu1 %v1110_v17 }
 0x625   : > { %1446 = vrot.lane.b32.xlu1 %v3168_v36, %s2653_s25 }
 0x65e   : > { %v1278_v18 = vpop.xlane.xlu0 %1277 }
 0x662   : > { %v1117_v19 = vpop.permute.xlu0 %1116 }
 0x663   : > { %1978 = vmatpush3.msra.mxu1 %v1117_v19 }
 0x664   : > { %1987 = vmatprep.subr.mxu1 %v2650_v1 }
 0x66c   : > { %v1443_v20 = vpop.xlane.xlu1 %1442 }
 0x670   : > { %v1282_v21 = vpop.permute.xlu1 %1281 }
 0x6a1   : > { %v1112_v22 = vpop.xlane.xlu1 %1111 }
 0x6a2   : > { %2211 = vrcp.f32 %v1112_v22 }
 0x6a3   : > { %2213 = vrcp.f32 %v1278_v18 }
 0x6a4   : > { %2215 = vrcp.f32 %v1443_v20 }
 0x6a5   : > { %v1447_v28 = vpop.permute.xlu1 %1446 }
 0x6ac   : > { %v2212_v23 = vpop.eup %2211 }
 0x6ad   : > { %v1114_v24 = vmul.f32 %v2212_v23, %v2210_v16  ;;  %v2214_v25 = vpop.eup %2213 }
 0x6ae   : > { %v1280_v26 = vmul.f32 %v2214_v25, %v2206_v8  ;;  %v2216_v27 = vpop.eup %2215 }
 0x6af   : > { %1980 = vmatmul.mubr.msk.f32.vlgmr.msra.gmra.mrb[8].mxu1 %vm865_vm2, %v1114_v24  ;;  %v1445_v29 = vmul.f32 %v2216_v27, %v2208_v12 }
 0x6b0   : > { %1988 = vmatpush3.msra.mxu1 %v1282_v21  ;;  %1989 = vmatprep.mubr.msk.f32.mxu1 %vm2649_vm0, %v2650_v1 }
 0x6b1   : > { %1997 = vmatprep.subr.mxu1 %v2650_v1 }
 0x6b3   : > { %1990 = vmatmul.mubr.msk.f32.vlgmr.msra.gmra.mrb[10].mxu1 %vm865_vm2, %v1280_v26 }
 0x6b4   : > { %1998 = vmatpush3.msra.mxu1 %v1447_v28  ;;  %1999 = vmatprep.mubr.msk.f32.mxu1 %vm2649_vm0, %v2650_v1 }
 0x6b7   : > { %2000 = vmatmul.mubr.msk.f32.vlgmr.msra.gmra.mrb[12].mxu1 %vm865_vm2, %v1445_v29 }
 0x782   : > { %v1188_v36 = vpop.f32.mrb[8].mxu1 }
 0x783   : > { %1523 = vrot.lane.b32.xlu0 %v1188_v36, %s2654_s15  ;;  %v1981_v37 = vpop.f32.mrb[9].mxu1 }
 0x786   : > { %v1353_v38 = vpop.f32.mrb[10].mxu1 }
 0x787   : > { %1527 = vrot.lane.b32.xlu1 %v1353_v38, %s2655_s22  ;;  %v1991_v1 = vpop.f32.mrb[11].mxu1 }
 0x78a   : > { %v1518_v39 = vpop.f32.mrb[12].mxu1 }
 0x78b   : > { %1531 = vrot.lane.b32.xlu0 %v1518_v39, %s2656_s9  ;;  %v2001_v40 = vpop.f32.mrb[13].mxu1 }
 0x7f5   : > { %v1524_v41 = vpop.permute.xlu0 %1523 }
 0x7f6   : > { %v1534_v42 = vsel %vm865_vm2, %v3194_v59, %v1524_v41 }
 0x7f9   : > { %v1528_v0 = vpop.permute.xlu1 %1527 }
 0x7fa   : > { %v1536_v43 = vsel %vm1535_vm3, %v1534_v42, %v1528_v0 }
 0x7fd   : > { %v1532_v44 = vpop.permute.xlu0 %1531 }
 0x7fe   : > { %v1538_v45 = vsel %vm1537_vm4, %v1536_v43, %v1532_v44 }
 0x7ff   : > { %2011 = vmatmul.mubr.msk.f32.vlgmr.msra.gmra.mrb[8].mxu0 %vm614_vm1, %v1538_v45 }
 0x8d2   : > { %v1619_v47 = vpop.f32.mrb[8].mxu0 }
 0x8d3   : > { %v1620_v48 = vadd.f32 %v1887_v46, %v1619_v47  ;;  %v2012_v49 = vpop.f32.mrb[9].mxu0 }
 0x8d5   : > { %1623 = vst.msk [vmem:[%s597_s11] sm:$0xff] %vm614_vm1, %v1620_v48 }
 0x8d6   : > { %2544 = shalt.err (!%p2541_p3)
}
 0x8d7   : > { %s2545_s7 = scalar_lea.hbm %s3225_s2, 128  ;;  %s2549_s23 = scalar_lea.hbm %s3367_s28, 256 }
 0x8d8   : > { %p2546_p13 = scmp.ne.s32.totalorder %s3225_s2, %s2545_s7  ;;  %p2550_p8 = scmp.lt.u32.totalorder %s3225_s2, %s3367_s28 }
 0x8d9   : > { %p2551_p12 = scmp.lt.u32.totalorder %s2549_s23, %s2545_s7  ;;  %p2553_p9 = scmp.lt.u32.totalorder %s2545_s7, %s3225_s2 }
 0x8da   : > { %p2547_p2 = pnand %p2546_p13, %p3368_p10 }
 0x8db   : > { %p2552_p1 = por %p2551_p12, %p2550_p8 }
 0x8dc   : > { %p2548_p4 = pneg %p2547_p2 }
 0x8dd   : > { %p2554_p5 = por %p2553_p9, %p2552_p1 }
 0x8df   : > { %p2555_p11 = pnand %p2554_p5, %p2548_p4 }
 0x8e1   : > { %2558 = shalt.err (!%p2555_p11)
}
 0x8e2   : > { %2075 = dma.vmem_to_hbm [thread:$0]  (%p3368_p10), %s3227_s20, 128, %s3225_s2, %s1625_s12  }
 0x8e3 PF: > { %s3369_s15 = sld [smem:[#allocation35_spill]]  ;;  %s3370_s22 = sld [smem:[#allocation31_spill]] }
 0x8e4   : > { %s1651_s3 = sand.u32 1, %s2613_s17  }
 0x8e5   : > { %s1652_s9 = scalar_lea.sflag [#allocation5], %s1651_s3 }
 0x8e9   : > { %p3371_p0 = scmp.ne.s32.totalorder %s3369_s15, 0  ;;  %p3372_p6 = scmp.ge.s32.totalorder %s3370_s22, 2 }
 0x8eb   : > { %p2113_p7 = pnand %p3372_p6, %p3371_p0 }
 0x8ed   : > { %2608 = dma.done.wait (!%p2113_p7), %s1652_s9, 128  }
 0x8ee   : > { %2610 = vsyncadd (!%p2113_p7), %s1652_s9, 4294967168  ;;  %s34_s22 = sadd.s32 1, %s3370_s22   ;;  %s3373_s26 = sld [smem:[#allocation34_spill]] }
 0x8ef   : > { %p31_p3 = scmp.ge.s32.totalorder %s34_s22, 4   ;;  %s3374_s20 = sld [smem:[#allocation30_spill]] }
 0x8f0   : > { %s3375_s21 = sld [smem:[#allocation33_spill]]  ;;  %s3376_s17 = smov %s2617_s18 }
 0x8f1   : > { %s3377_s18 = smov %s2621_s19  ;;  %33 = sbr.rel (!%p31_p3) target bundleno = 22 (0x16), region = 171 }
 0x8f4   : > { %s3378_s19 = smov %s3373_s26 }
 0x8f8   :  { %1657 = vsyncpa [#allocation4], 1 }
 0x8f9   :  { %1659 = vsyncpa [#allocation4 + $0x1], 1 }
 0x8fa   :  { %1660 = vsyncpa [#allocation7], 1 }
 0x8fb   :  { %1662 = vsyncpa [#allocation7 + $0x1], 1 }
 0x8fc   :  { %1663 = vsyncpa [#allocation10], 1 }
 0x8fd   :  { %1664 = vsyncpa [#allocation13], 1 }
 0x8fe   :  { %1665 = vsyncpa [#allocation16], 1 }
 0x8ff   :  { %1666 = vsyncpa [#allocation19], 1 }
 0x900   :  { %1667 = vsyncpa [#allocation5], 1 }
 0x901   :  { %1669 = vsyncpa [#allocation5 + $0x1], 1 }

</bundles_post_ra>
